<compile_context>
chip_gen: v5e
topology: v5e:2x2
jax: 0.10.0
libtpu: 0.0.40
codegen_flags: <defaults>
</compile_context>

<pallas_src>
import functools

import jax
import jax.numpy as jnp
from jax import lax
from jax.experimental import pallas as pl
from jax.experimental.pallas import tpu as pltpu


# -----------------------------------------------------------------------------
# Helpers
# -----------------------------------------------------------------------------
def _pick_tile(n, target):
    """Largest multiple-of-8 divisor of n that is <= target; falls back to full n."""
    if n <= target:
        return n
    best = None
    t = 8
    while t <= target:
        if n % t == 0:
            best = t
        t += 8
    # TODO(synk): odd sequence lengths fall back to a full-length block (no padding/
    # masking path); add padding if such shapes show up in practice.
    return best if best is not None else n


def _compiler_params(dimension_semantics):
    kwargs = dict(dimension_semantics=dimension_semantics)
    try:
        info = pltpu.get_tpu_info()
        cap = getattr(info, "vmem_capacity_bytes", None)
        if cap:
            kwargs["vmem_limit_bytes"] = int(cap * 0.85)
    except Exception:
        pass  # keep default scoped-VMEM limit
    return pltpu.CompilerParams(**kwargs)


def _default_bf16_exp():
    """bf16 exp only pays off on chips with a bf16 EUP path (v6e / v7x)."""
    try:
        kind = jax.devices()[0].device_kind.lower()
    except Exception:
        return False
    for tag in ("v2", "v3", "v4", "v5"):
        if tag in kind:
            return False
    return True


# -----------------------------------------------------------------------------
# Parameter preparation (done ONCE at model init; not on the per-call path)
# -----------------------------------------------------------------------------
def prepare_cross_attention_params(params, *, heads, dim_head):
    """PyTorch Linear weights are (out, in); y = x @ W^T.  Produce head-major,
    bf16, scale-folded weights used by the kernels."""
    scale = float(dim_head) ** -0.5

    def head_major_in(w_t):  # (Din, inner) -> (H, Din, dh)
        din = w_t.shape[0]
        return jnp.transpose(
            w_t.reshape(din, heads, dim_head), (1, 0, 2)).astype(jnp.bfloat16)

    wq_t = params["to_q_w"].T.astype(jnp.float32) * scale   # scale folded into Wq
    wk_t = params["to_k_w"].T.astype(jnp.float32)
    wv_t = params["to_v_w"].T.astype(jnp.float32)
    wo_t = params["to_out_w"].T.astype(jnp.float32)          # (inner, Dq)
    dq = wo_t.shape[1]
    return {
        "wq": head_major_in(wq_t),                                    # (H, Dq,  dh)
        "wk": head_major_in(wk_t),                                    # (H, Dkv, dh)
        "wv": head_major_in(wv_t),                                    # (H, Dkv, dh)
        "wo": wo_t.reshape(heads, dim_head, dq).astype(jnp.bfloat16),  # (H, dh, Dq)
        "bo": params["to_out_b"].astype(jnp.float32).reshape(1, dq),   # (1, Dq)
    }


# -----------------------------------------------------------------------------
# Kernel 1: head-major projection.  x (ts, Din) @ W_h (Din, dh) per head, per
# output tensor; outputs are (B, H, S, dh) bf16 so the attention kernel never
# has to lane-slice heads.
# -----------------------------------------------------------------------------
def _head_proj_kernel(x_ref, *refs, heads, n_w):
    w_refs = refs[:n_w]
    o_refs = refs[n_w:]
    x = x_ref[0]                                   # (ts, Din) bf16
    for w_ref, o_ref in zip(w_refs, o_refs):
        for h in range(heads):                     # leading-axis slice: no relayout
            o_ref[0, h] = jnp.dot(
                x, w_ref[h], preferred_element_type=jnp.float32
            ).astype(o_ref.dtype)


def _head_projection(x, weights, *, heads, dim_head, seq_tile=512):
    """x (B, S, Din) -> tuple of (B, H, S, dh) bf16 tensors, one per weight."""
    B, S, Din = x.shape
    ts = _pick_tile(S, seq_tile)
    n_w = len(weights)
    out_shapes = tuple(
        jax.ShapeDtypeStruct((B, heads, S, dim_head), jnp.bfloat16) for _ in weights)
    in_specs = [pl.BlockSpec((1, ts, Din), lambda b, i: (b, i, 0))]
    in_specs += [pl.BlockSpec((heads, Din, dim_head), lambda b, i: (0, 0, 0))
                 for _ in weights]
    out_specs = [pl.BlockSpec((1, heads, ts, dim_head), lambda b, i: (b, 0, i, 0))
                 for _ in weights]
    return pl.pallas_call(
        functools.partial(_head_proj_kernel, heads=heads, n_w=n_w),
        out_shape=out_shapes,
        grid_spec=pltpu.PrefetchScalarGridSpec(
            num_scalar_prefetch=0,
            grid=(B, S // ts),
            in_specs=in_specs,
            out_specs=out_specs,
        ),
        compiler_params=_compiler_params(("parallel", "parallel")),
    )(x, *weights)


# -----------------------------------------------------------------------------
# Kernel 2: flash attention (online softmax over KV tiles) fused with the
# output projection to_out[0].  Grid = (B, q_tiles, heads, kv_tiles); the
# per-head (attn_h @ Wo_h) contributions are accumulated in f32 VMEM scratch
# and written once, lane-dense, in bf16.
# -----------------------------------------------------------------------------
def _flash_attn_out_kernel(q_ref, k_ref, v_ref, wo_ref, bo_ref, o_ref,
                           m_sc, l_sc, acc_sc, oacc_sc, *, bf16_exp):
    h = pl.program_id(2)
    kv_i = pl.program_id(3)

    @pl.when((h == 0) & (kv_i == 0))
    def _():
        oacc_sc[...] = jnp.broadcast_to(bo_ref[...], oacc_sc.shape)

    @pl.when(kv_i == 0)
    def _():
        m_sc[...] = jnp.full_like(m_sc, -jnp.inf)
        l_sc[...] = jnp.zeros_like(l_sc)
        acc_sc[...] = jnp.zeros_like(acc_sc)

    q = q_ref[0, 0]          # (tq, dh) bf16, scale pre-folded into Wq
    k = k_ref[0, 0]          # (tk, dh) bf16
    v = v_ref[0, 0]          # (tk, dh) bf16

    # scores = q @ k^T without materializing the transpose.
    s = lax.dot_general(q, k, (((1,), (1,)), ((), ())),
                        preferred_element_type=jnp.float32)            # (tq, tk) f32

    m_prev = m_sc[...]                                                  # (tq, 1)
    m_new = jnp.maximum(m_prev, jnp.max(s, axis=-1, keepdims=True))
    alpha = jnp.exp(m_prev - m_new)                                     # (tq, 1)
    x = s - m_new
    # exp in bf16 on chips with a bf16 EUP path; p feeds a bf16 MXU matmul anyway.
    p = jnp.exp(x.astype(jnp.bfloat16)) if bf16_exp else jnp.exp(x)     # (tq, tk)

    l_sc[...] = alpha * l_sc[...] + jnp.sum(
        p.astype(jnp.float32), axis=-1, keepdims=True)
    pv = jnp.dot(p.astype(v.dtype), v, preferred_element_type=jnp.float32)  # (tq, dh)
    acc_sc[...] = alpha * acc_sc[...] + pv
    m_sc[...] = m_new

    @pl.when(kv_i == pl.num_programs(3) - 1)
    def _():
        inv = pl.reciprocal(l_sc[...], approx=True)                     # (tq, 1)
        attn = (acc_sc[...] * inv).astype(wo_ref.dtype)                 # (tq, dh) bf16
        oacc_sc[...] += jnp.dot(attn, wo_ref[0],
                                preferred_element_type=jnp.float32)     # (tq, Dq)

        @pl.when(h == pl.num_programs(2) - 1)
        def _():
            o_ref[0] = oacc_sc[...].astype(o_ref.dtype)


# -----------------------------------------------------------------------------
# Wrapper: CrossAttention.forward (default config, no mask / group_norm / added_kv)
# -----------------------------------------------------------------------------
def cross_attention_forward(hidden_states, prepared, *, heads, dim_head,
                            encoder_hidden_states=None,
                            q_tile=512, kv_tile=512, proj_tile=512,
                            out_dtype=jnp.bfloat16, bf16_exp=None):
    if bf16_exp is None:
        bf16_exp = _default_bf16_exp()

    B, S, Dq = hidden_states.shape
    self_attn = encoder_hidden_states is None
    ctx = hidden_states if self_attn else encoder_hidden_states
    assert ctx.shape[0] == B
    Sk = ctx.shape[1]

    hs16 = hidden_states.astype(jnp.bfloat16)

    # ---- Q/K/V projections: head-major (B, H, S, dh) bf16 ----
    if self_attn:
        q, k, v = _head_projection(
            hs16, (prepared["wq"], prepared["wk"], prepared["wv"]),
            heads=heads, dim_head=dim_head, seq_tile=proj_tile)
    else:
        ctx16 = ctx.astype(jnp.bfloat16)
        (q,) = _head_projection(hs16, (prepared["wq"],),
                                heads=heads, dim_head=dim_head, seq_tile=proj_tile)
        k, v = _head_projection(ctx16, (prepared["wk"], prepared["wv"]),
                                heads=heads, dim_head=dim_head, seq_tile=proj_tile)

    # ---- flash attention + fused output projection ----
    tq = _pick_tile(S, q_tile)
    tk = _pick_tile(Sk, kv_tile)

    out = pl.pallas_call(
        functools.partial(_flash_attn_out_kernel, bf16_exp=bf16_exp),
        out_shape=jax.ShapeDtypeStruct((B, S, Dq), out_dtype),
        grid_spec=pltpu.PrefetchScalarGridSpec(
            num_scalar_prefetch=0,
            grid=(B, S // tq, heads, Sk // tk),
            in_specs=[
                pl.BlockSpec((1, 1, tq, dim_head), lambda b, qi, h, ki: (b, h, qi, 0)),  # Q
                pl.BlockSpec((1, 1, tk, dim_head), lambda b, qi, h, ki: (b, h, ki, 0)),  # K
                pl.BlockSpec((1, 1, tk, dim_head), lambda b, qi, h, ki: (b, h, ki, 0)),  # V
                pl.BlockSpec((1, dim_head, Dq),    lambda b, qi, h, ki: (h, 0, 0)),      # Wo_h
                pl.BlockSpec((1, Dq),              lambda b, qi, h, ki: (0, 0)),         # b_out
            ],
            out_specs=pl.BlockSpec((1, tq, Dq), lambda b, qi, h, ki: (b, qi, 0)),
            scratch_shapes=[
                pltpu.VMEM((tq, 1), jnp.float32),          # running max m
                pltpu.VMEM((tq, 1), jnp.float32),          # running denom l
                pltpu.VMEM((tq, dim_head), jnp.float32),   # running PV accumulator
                pltpu.VMEM((tq, Dq), jnp.float32),         # per-(b,qi) output accumulator
            ],
        ),
        compiler_params=_compiler_params(
            ("parallel", "parallel", "arbitrary", "arbitrary")),
    )(q, k, v, prepared["wo"], prepared["bo"])
    # to_out[1] is Dropout(0.0) -> identity at eval time.
    return out


# -----------------------------------------------------------------------------
# Pure-JAX (f32) reference for verification
# -----------------------------------------------------------------------------
def reference_forward(hidden_states, params, *, heads, dim_head,
                      encoder_hidden_states=None):
    B, S, Dq = hidden_states.shape
    ctx = hidden_states if encoder_hidden_states is None else encoder_hidden_states
    scale = float(dim_head) ** -0.5
    q = hidden_states @ params["to_q_w"].T
    k = ctx @ params["to_k_w"].T
    v = ctx @ params["to_v_w"].T

    def to_heads(t):
        b, s, d = t.shape
        return t.reshape(b, s, heads, d // heads).transpose(0, 2, 1, 3).reshape(
            b * heads, s, d // heads)

    q, k, v = to_heads(q), to_heads(k), to_heads(v)
    scores = jnp.einsum("bqd,bkd->bqk", q, k) * scale
    probs = jax.nn.softmax(scores, axis=-1)
    o = jnp.einsum("bqk,bkd->bqd", probs, v)
    o = o.reshape(B, heads, S, dim_head).transpose(0, 2, 1, 3).reshape(
        B, S, heads * dim_head)
    return o @ params["to_out_w"].T + params["to_out_b"]


if __name__ == "__main__":
    # Small shapes consistent with the module's forward (batch, seq, channels).
    B, S = 2, 16
    query_dim = 32
    heads, dim_head = 4, 8
    inner_dim = heads * dim_head          # 32
    cross_attention_dim = 16
    Sk = 24

    key = jax.random.PRNGKey(0)
    keys = jax.random.split(key, 10)

    hidden_states = jax.random.normal(keys[0], (B, S, query_dim), dtype=jnp.float32)
    encoder_hidden = jax.random.normal(keys[1], (B, Sk, cross_attention_dim),
                                       dtype=jnp.float32)

    # Deterministic synthetic parameters (PyTorch Linear layout: (out, in)).
    self_params = {
        "to_q_w": 0.1 * jax.random.normal(keys[2], (inner_dim, query_dim), jnp.float32),
        "to_k_w": 0.1 * jax.random.normal(keys[3], (inner_dim, query_dim), jnp.float32),
        "to_v_w": 0.1 * jax.random.normal(keys[4], (inner_dim, query_dim), jnp.float32),
        "to_out_w": 0.1 * jax.random.normal(keys[5], (query_dim, inner_dim), jnp.float32),
        "to_out_b": 0.01 * jax.random.normal(keys[6], (query_dim,), jnp.float32),
    }
    cross_params = dict(self_params)
    cross_params["to_k_w"] = 0.1 * jax.random.normal(
        keys[7], (inner_dim, cross_attention_dim), jnp.float32)
    cross_params["to_v_w"] = 0.1 * jax.random.normal(
        keys[8], (inner_dim, cross_attention_dim), jnp.float32)

    # --- self-attention path (encoder_hidden_states=None) ---
    prep_self = prepare_cross_attention_params(self_params, heads=heads, dim_head=dim_head)
    out_self = cross_attention_forward(hidden_states, prep_self,
                                       heads=heads, dim_head=dim_head)
    out_self = jax.block_until_ready(out_self)
    ref_self = reference_forward(hidden_states, self_params,
                                 heads=heads, dim_head=dim_head)
    assert out_self.shape == (B, S, query_dim)
    err_self = jnp.max(jnp.abs(out_self.astype(jnp.float32) - ref_self))
    assert jnp.allclose(out_self.astype(jnp.float32), ref_self, atol=4e-2, rtol=4e-2), (
        f"self-attn mismatch vs pure-JAX reference (max abs err {err_self})")

    # --- cross-attention path ---
    prep_cross = prepare_cross_attention_params(cross_params, heads=heads, dim_head=dim_head)
    out_cross = cross_attention_forward(hidden_states, prep_cross,
                                        heads=heads, dim_head=dim_head,
                                        encoder_hidden_states=encoder_hidden)
    out_cross = jax.block_until_ready(out_cross)
    ref_cross = reference_forward(hidden_states, cross_params,
                                  heads=heads, dim_head=dim_head,
                                  encoder_hidden_states=encoder_hidden)
    assert out_cross.shape == (B, S, query_dim)
    err_cross = jnp.max(jnp.abs(out_cross.astype(jnp.float32) - ref_cross))
    assert jnp.allclose(out_cross.astype(jnp.float32), ref_cross, atol=4e-2, rtol=4e-2), (
        f"cross-attn mismatch vs pure-JAX reference (max abs err {err_cross})")

    # TODO(synk): group_norm / added_kv_proj / attention_mask / sliced-attention paths
    # are not exercised (disabled by the module's default constructor args).
    print("KERNEL_OK")
</pallas_src>

<mosaic_0001>
module attributes {stable_mosaic.version = 11 : i64} {
  func.func @_head_proj_kernel(%arg0: i32, %arg1: i32, %arg2: memref<1x16x32xbf16, #tpu.memory_space<vmem>>, %arg3: memref<4x32x8xbf16, #tpu.memory_space<vmem>>, %arg4: memref<4x32x8xbf16, #tpu.memory_space<vmem>>, %arg5: memref<4x32x8xbf16, #tpu.memory_space<vmem>>, %arg6: memref<1x4x16x8xbf16, #tpu.memory_space<vmem>>, %arg7: memref<1x4x16x8xbf16, #tpu.memory_space<vmem>>, %arg8: memref<1x4x16x8xbf16, #tpu.memory_space<vmem>>) attributes {dimension_semantics = [#tpu.dimension_semantics<parallel>, #tpu.dimension_semantics<parallel>], iteration_bounds = array<i64: 2, 1>, scalar_prefetch = 0 : i64, scratch_operands = 0 : i64, tpu.core_type = #tpu.core_type<tc>, window_params = [{transform_indices = @transform_0, window_bounds = array<i64: 1, 16, 32>}, {pipeline_mode = #tpu.pipeline_mode<synchronous>, transform_indices = @transform_1, window_bounds = array<i64: 4, 32, 8>}, {pipeline_mode = #tpu.pipeline_mode<synchronous>, transform_indices = @transform_2, window_bounds = array<i64: 4, 32, 8>}, {pipeline_mode = #tpu.pipeline_mode<synchronous>, transform_indices = @transform_3, window_bounds = array<i64: 4, 32, 8>}, {transform_indices = @transform_4, window_bounds = array<i64: 1, 4, 16, 8>}, {transform_indices = @transform_5, window_bounds = array<i64: 1, 4, 16, 8>}, {transform_indices = @transform_6, window_bounds = array<i64: 1, 4, 16, 8>}]} {
    %c0 = arith.constant 0 : index
    %c0_0 = arith.constant 0 : index
    %c0_1 = arith.constant 0 : index
    %0 = vector.load %arg2[%c0, %c0_0, %c0_1] : memref<1x16x32xbf16, #tpu.memory_space<vmem>>, vector<1x16x32xbf16>
    %1 = vector.shape_cast %0 : vector<1x16x32xbf16> to vector<16x32xbf16>
    %c0_2 = arith.constant 0 : index
    %c0_3 = arith.constant 0 : index
    %c0_4 = arith.constant 0 : index
    %2 = vector.load %arg3[%c0_2, %c0_3, %c0_4] : memref<4x32x8xbf16, #tpu.memory_space<vmem>>, vector<1x32x8xbf16>
    %3 = vector.shape_cast %2 : vector<1x32x8xbf16> to vector<32x8xbf16>
    %cst = arith.constant dense<0.000000e+00> : vector<16x8xf32>
    %4 = tpu.matmul %1, %3, %cst {dimension_numbers = #tpu.dot_dimension_numbers<[1], [0], [0], [1], [0, 0, 1, 1], [], []>} : vector<16x32xbf16>, vector<32x8xbf16>, vector<16x8xf32> -> vector<16x8xf32>
    %5 = arith.truncf %4 : vector<16x8xf32> to vector<16x8xbf16>
    %c0_5 = arith.constant 0 : index
    %c0_6 = arith.constant 0 : index
    %c0_7 = arith.constant 0 : index
    %c0_8 = arith.constant 0 : index
    %6 = vector.load %arg6[%c0_5, %c0_6, %c0_7, %c0_8] : memref<1x4x16x8xbf16, #tpu.memory_space<vmem>>, vector<1x1x16x8xbf16>
    %7 = vector.shape_cast %6 : vector<1x1x16x8xbf16> to vector<16x8xbf16>
    %8 = vector.shape_cast %5 : vector<16x8xbf16> to vector<1x1x16x8xbf16>
    tpu.vector_store %arg6[%c0_5, %c0_6, %c0_7, %c0_8], %8 {strides = array<i32>} : memref<1x4x16x8xbf16, #tpu.memory_space<vmem>>, vector<1x1x16x8xbf16>,
    %c1 = arith.constant 1 : index
    %c0_9 = arith.constant 0 : index
    %c0_10 = arith.constant 0 : index
    %9 = vector.load %arg3[%c1, %c0_9, %c0_10] : memref<4x32x8xbf16, #tpu.memory_space<vmem>>, vector<1x32x8xbf16>
    %10 = vector.shape_cast %9 : vector<1x32x8xbf16> to vector<32x8xbf16>
    %cst_11 = arith.constant dense<0.000000e+00> : vector<16x8xf32>
    %11 = tpu.matmul %1, %10, %cst_11 {dimension_numbers = #tpu.dot_dimension_numbers<[1], [0], [0], [1], [0, 0, 1, 1], [], []>} : vector<16x32xbf16>, vector<32x8xbf16>, vector<16x8xf32> -> vector<16x8xf32>
    %12 = arith.truncf %11 : vector<16x8xf32> to vector<16x8xbf16>
    %c0_12 = arith.constant 0 : index
    %c1_13 = arith.constant 1 : index
    %c0_14 = arith.constant 0 : index
    %c0_15 = arith.constant 0 : index
    %13 = vector.load %arg6[%c0_12, %c1_13, %c0_14, %c0_15] : memref<1x4x16x8xbf16, #tpu.memory_space<vmem>>, vector<1x1x16x8xbf16>
    %14 = vector.shape_cast %13 : vector<1x1x16x8xbf16> to vector<16x8xbf16>
    %15 = vector.shape_cast %12 : vector<16x8xbf16> to vector<1x1x16x8xbf16>
    tpu.vector_store %arg6[%c0_12, %c1_13, %c0_14, %c0_15], %15 {strides = array<i32>} : memref<1x4x16x8xbf16, #tpu.memory_space<vmem>>, vector<1x1x16x8xbf16>,
    %c2 = arith.constant 2 : index
    %c0_16 = arith.constant 0 : index
    %c0_17 = arith.constant 0 : index
    %16 = vector.load %arg3[%c2, %c0_16, %c0_17] : memref<4x32x8xbf16, #tpu.memory_space<vmem>>, vector<1x32x8xbf16>
    %17 = vector.shape_cast %16 : vector<1x32x8xbf16> to vector<32x8xbf16>
    %cst_18 = arith.constant dense<0.000000e+00> : vector<16x8xf32>
    %18 = tpu.matmul %1, %17, %cst_18 {dimension_numbers = #tpu.dot_dimension_numbers<[1], [0], [0], [1], [0, 0, 1, 1], [], []>} : vector<16x32xbf16>, vector<32x8xbf16>, vector<16x8xf32> -> vector<16x8xf32>
    %19 = arith.truncf %18 : vector<16x8xf32> to vector<16x8xbf16>
    %c0_19 = arith.constant 0 : index
    %c2_20 = arith.constant 2 : index
    %c0_21 = arith.constant 0 : index
    %c0_22 = arith.constant 0 : index
    %20 = vector.load %arg6[%c0_19, %c2_20, %c0_21, %c0_22] : memref<1x4x16x8xbf16, #tpu.memory_space<vmem>>, vector<1x1x16x8xbf16>
    %21 = vector.shape_cast %20 : vector<1x1x16x8xbf16> to vector<16x8xbf16>
    %22 = vector.shape_cast %19 : vector<16x8xbf16> to vector<1x1x16x8xbf16>
    tpu.vector_store %arg6[%c0_19, %c2_20, %c0_21, %c0_22], %22 {strides = array<i32>} : memref<1x4x16x8xbf16, #tpu.memory_space<vmem>>, vector<1x1x16x8xbf16>,
    %c3 = arith.constant 3 : index
    %c0_23 = arith.constant 0 : index
    %c0_24 = arith.constant 0 : index
    %23 = vector.load %arg3[%c3, %c0_23, %c0_24] : memref<4x32x8xbf16, #tpu.memory_space<vmem>>, vector<1x32x8xbf16>
    %24 = vector.shape_cast %23 : vector<1x32x8xbf16> to vector<32x8xbf16>
    %cst_25 = arith.constant dense<0.000000e+00> : vector<16x8xf32>
    %25 = tpu.matmul %1, %24, %cst_25 {dimension_numbers = #tpu.dot_dimension_numbers<[1], [0], [0], [1], [0, 0, 1, 1], [], []>} : vector<16x32xbf16>, vector<32x8xbf16>, vector<16x8xf32> -> vector<16x8xf32>
    %26 = arith.truncf %25 : vector<16x8xf32> to vector<16x8xbf16>
    %c0_26 = arith.constant 0 : index
    %c3_27 = arith.constant 3 : index
    %c0_28 = arith.constant 0 : index
    %c0_29 = arith.constant 0 : index
    %27 = vector.load %arg6[%c0_26, %c3_27, %c0_28, %c0_29] : memref<1x4x16x8xbf16, #tpu.memory_space<vmem>>, vector<1x1x16x8xbf16>
    %28 = vector.shape_cast %27 : vector<1x1x16x8xbf16> to vector<16x8xbf16>
    %29 = vector.shape_cast %26 : vector<16x8xbf16> to vector<1x1x16x8xbf16>
    tpu.vector_store %arg6[%c0_26, %c3_27, %c0_28, %c0_29], %29 {strides = array<i32>} : memref<1x4x16x8xbf16, #tpu.memory_space<vmem>>, vector<1x1x16x8xbf16>,
    %c0_30 = arith.constant 0 : index
    %c0_31 = arith.constant 0 : index
    %c0_32 = arith.constant 0 : index
    %30 = vector.load %arg4[%c0_30, %c0_31, %c0_32] : memref<4x32x8xbf16, #tpu.memory_space<vmem>>, vector<1x32x8xbf16>
    %31 = vector.shape_cast %30 : vector<1x32x8xbf16> to vector<32x8xbf16>
    %cst_33 = arith.constant dense<0.000000e+00> : vector<16x8xf32>
    %32 = tpu.matmul %1, %31, %cst_33 {dimension_numbers = #tpu.dot_dimension_numbers<[1], [0], [0], [1], [0, 0, 1, 1], [], []>} : vector<16x32xbf16>, vector<32x8xbf16>, vector<16x8xf32> -> vector<16x8xf32>
    %33 = arith.truncf %32 : vector<16x8xf32> to vector<16x8xbf16>
    %c0_34 = arith.constant 0 : index
    %c0_35 = arith.constant 0 : index
    %c0_36 = arith.constant 0 : index
    %c0_37 = arith.constant 0 : index
    %34 = vector.load %arg7[%c0_34, %c0_35, %c0_36, %c0_37] : memref<1x4x16x8xbf16, #tpu.memory_space<vmem>>, vector<1x1x16x8xbf16>
    %35 = vector.shape_cast %34 : vector<1x1x16x8xbf16> to vector<16x8xbf16>
    %36 = vector.shape_cast %33 : vector<16x8xbf16> to vector<1x1x16x8xbf16>
    tpu.vector_store %arg7[%c0_34, %c0_35, %c0_36, %c0_37], %36 {strides = array<i32>} : memref<1x4x16x8xbf16, #tpu.memory_space<vmem>>, vector<1x1x16x8xbf16>,
    %c1_38 = arith.constant 1 : index
    %c0_39 = arith.constant 0 : index
    %c0_40 = arith.constant 0 : index
    %37 = vector.load %arg4[%c1_38, %c0_39, %c0_40] : memref<4x32x8xbf16, #tpu.memory_space<vmem>>, vector<1x32x8xbf16>
    %38 = vector.shape_cast %37 : vector<1x32x8xbf16> to vector<32x8xbf16>
    %cst_41 = arith.constant dense<0.000000e+00> : vector<16x8xf32>
    %39 = tpu.matmul %1, %38, %cst_41 {dimension_numbers = #tpu.dot_dimension_numbers<[1], [0], [0], [1], [0, 0, 1, 1], [], []>} : vector<16x32xbf16>, vector<32x8xbf16>, vector<16x8xf32> -> vector<16x8xf32>
    %40 = arith.truncf %39 : vector<16x8xf32> to vector<16x8xbf16>
    %c0_42 = arith.constant 0 : index
    %c1_43 = arith.constant 1 : index
    %c0_44 = arith.constant 0 : index
    %c0_45 = arith.constant 0 : index
    %41 = vector.load %arg7[%c0_42, %c1_43, %c0_44, %c0_45] : memref<1x4x16x8xbf16, #tpu.memory_space<vmem>>, vector<1x1x16x8xbf16>
    %42 = vector.shape_cast %41 : vector<1x1x16x8xbf16> to vector<16x8xbf16>
    %43 = vector.shape_cast %40 : vector<16x8xbf16> to vector<1x1x16x8xbf16>
    tpu.vector_store %arg7[%c0_42, %c1_43, %c0_44, %c0_45], %43 {strides = array<i32>} : memref<1x4x16x8xbf16, #tpu.memory_space<vmem>>, vector<1x1x16x8xbf16>,
    %c2_46 = arith.constant 2 : index
    %c0_47 = arith.constant 0 : index
    %c0_48 = arith.constant 0 : index
    %44 = vector.load %arg4[%c2_46, %c0_47, %c0_48] : memref<4x32x8xbf16, #tpu.memory_space<vmem>>, vector<1x32x8xbf16>
    %45 = vector.shape_cast %44 : vector<1x32x8xbf16> to vector<32x8xbf16>
    %cst_49 = arith.constant dense<0.000000e+00> : vector<16x8xf32>
    %46 = tpu.matmul %1, %45, %cst_49 {dimension_numbers = #tpu.dot_dimension_numbers<[1], [0], [0], [1], [0, 0, 1, 1], [], []>} : vector<16x32xbf16>, vector<32x8xbf16>, vector<16x8xf32> -> vector<16x8xf32>
    %47 = arith.truncf %46 : vector<16x8xf32> to vector<16x8xbf16>
    %c0_50 = arith.constant 0 : index
    %c2_51 = arith.constant 2 : index
    %c0_52 = arith.constant 0 : index
    %c0_53 = arith.constant 0 : index
    %48 = vector.load %arg7[%c0_50, %c2_51, %c0_52, %c0_53] : memref<1x4x16x8xbf16, #tpu.memory_space<vmem>>, vector<1x1x16x8xbf16>
    %49 = vector.shape_cast %48 : vector<1x1x16x8xbf16> to vector<16x8xbf16>
    %50 = vector.shape_cast %47 : vector<16x8xbf16> to vector<1x1x16x8xbf16>
    tpu.vector_store %arg7[%c0_50, %c2_51, %c0_52, %c0_53], %50 {strides = array<i32>} : memref<1x4x16x8xbf16, #tpu.memory_space<vmem>>, vector<1x1x16x8xbf16>,
    %c3_54 = arith.constant 3 : index
    %c0_55 = arith.constant 0 : index
    %c0_56 = arith.constant 0 : index
    %51 = vector.load %arg4[%c3_54, %c0_55, %c0_56] : memref<4x32x8xbf16, #tpu.memory_space<vmem>>, vector<1x32x8xbf16>
    %52 = vector.shape_cast %51 : vector<1x32x8xbf16> to vector<32x8xbf16>
    %cst_57 = arith.constant dense<0.000000e+00> : vector<16x8xf32>
    %53 = tpu.matmul %1, %52, %cst_57 {dimension_numbers = #tpu.dot_dimension_numbers<[1], [0], [0], [1], [0, 0, 1, 1], [], []>} : vector<16x32xbf16>, vector<32x8xbf16>, vector<16x8xf32> -> vector<16x8xf32>
    %54 = arith.truncf %53 : vector<16x8xf32> to vector<16x8xbf16>
    %c0_58 = arith.constant 0 : index
    %c3_59 = arith.constant 3 : index
    %c0_60 = arith.constant 0 : index
    %c0_61 = arith.constant 0 : index
    %55 = vector.load %arg7[%c0_58, %c3_59, %c0_60, %c0_61] : memref<1x4x16x8xbf16, #tpu.memory_space<vmem>>, vector<1x1x16x8xbf16>
    %56 = vector.shape_cast %55 : vector<1x1x16x8xbf16> to vector<16x8xbf16>
    %57 = vector.shape_cast %54 : vector<16x8xbf16> to vector<1x1x16x8xbf16>
    tpu.vector_store %arg7[%c0_58, %c3_59, %c0_60, %c0_61], %57 {strides = array<i32>} : memref<1x4x16x8xbf16, #tpu.memory_space<vmem>>, vector<1x1x16x8xbf16>,
    %c0_62 = arith.constant 0 : index
    %c0_63 = arith.constant 0 : index
    %c0_64 = arith.constant 0 : index
    %58 = vector.load %arg5[%c0_62, %c0_63, %c0_64] : memref<4x32x8xbf16, #tpu.memory_space<vmem>>, vector<1x32x8xbf16>
    %59 = vector.shape_cast %58 : vector<1x32x8xbf16> to vector<32x8xbf16>
    %cst_65 = arith.constant dense<0.000000e+00> : vector<16x8xf32>
    %60 = tpu.matmul %1, %59, %cst_65 {dimension_numbers = #tpu.dot_dimension_numbers<[1], [0], [0], [1], [0, 0, 1, 1], [], []>} : vector<16x32xbf16>, vector<32x8xbf16>, vector<16x8xf32> -> vector<16x8xf32>
    %61 = arith.truncf %60 : vector<16x8xf32> to vector<16x8xbf16>
    %c0_66 = arith.constant 0 : index
    %c0_67 = arith.constant 0 : index
    %c0_68 = arith.constant 0 : index
    %c0_69 = arith.constant 0 : index
    %62 = vector.load %arg8[%c0_66, %c0_67, %c0_68, %c0_69] : memref<1x4x16x8xbf16, #tpu.memory_space<vmem>>, vector<1x1x16x8xbf16>
    %63 = vector.shape_cast %62 : vector<1x1x16x8xbf16> to vector<16x8xbf16>
    %64 = vector.shape_cast %61 : vector<16x8xbf16> to vector<1x1x16x8xbf16>
    tpu.vector_store %arg8[%c0_66, %c0_67, %c0_68, %c0_69], %64 {strides = array<i32>} : memref<1x4x16x8xbf16, #tpu.memory_space<vmem>>, vector<1x1x16x8xbf16>,
    %c1_70 = arith.constant 1 : index
    %c0_71 = arith.constant 0 : index
    %c0_72 = arith.constant 0 : index
    %65 = vector.load %arg5[%c1_70, %c0_71, %c0_72] : memref<4x32x8xbf16, #tpu.memory_space<vmem>>, vector<1x32x8xbf16>
    %66 = vector.shape_cast %65 : vector<1x32x8xbf16> to vector<32x8xbf16>
    %cst_73 = arith.constant dense<0.000000e+00> : vector<16x8xf32>
    %67 = tpu.matmul %1, %66, %cst_73 {dimension_numbers = #tpu.dot_dimension_numbers<[1], [0], [0], [1], [0, 0, 1, 1], [], []>} : vector<16x32xbf16>, vector<32x8xbf16>, vector<16x8xf32> -> vector<16x8xf32>
    %68 = arith.truncf %67 : vector<16x8xf32> to vector<16x8xbf16>
    %c0_74 = arith.constant 0 : index
    %c1_75 = arith.constant 1 : index
    %c0_76 = arith.constant 0 : index
    %c0_77 = arith.constant 0 : index
    %69 = vector.load %arg8[%c0_74, %c1_75, %c0_76, %c0_77] : memref<1x4x16x8xbf16, #tpu.memory_space<vmem>>, vector<1x1x16x8xbf16>
    %70 = vector.shape_cast %69 : vector<1x1x16x8xbf16> to vector<16x8xbf16>
    %71 = vector.shape_cast %68 : vector<16x8xbf16> to vector<1x1x16x8xbf16>
    tpu.vector_store %arg8[%c0_74, %c1_75, %c0_76, %c0_77], %71 {strides = array<i32>} : memref<1x4x16x8xbf16, #tpu.memory_space<vmem>>, vector<1x1x16x8xbf16>,
    %c2_78 = arith.constant 2 : index
    %c0_79 = arith.constant 0 : index
    %c0_80 = arith.constant 0 : index
    %72 = vector.load %arg5[%c2_78, %c0_79, %c0_80] : memref<4x32x8xbf16, #tpu.memory_space<vmem>>, vector<1x32x8xbf16>
    %73 = vector.shape_cast %72 : vector<1x32x8xbf16> to vector<32x8xbf16>
    %cst_81 = arith.constant dense<0.000000e+00> : vector<16x8xf32>
    %74 = tpu.matmul %1, %73, %cst_81 {dimension_numbers = #tpu.dot_dimension_numbers<[1], [0], [0], [1], [0, 0, 1, 1], [], []>} : vector<16x32xbf16>, vector<32x8xbf16>, vector<16x8xf32> -> vector<16x8xf32>
    %75 = arith.truncf %74 : vector<16x8xf32> to vector<16x8xbf16>
    %c0_82 = arith.constant 0 : index
    %c2_83 = arith.constant 2 : index
    %c0_84 = arith.constant 0 : index
    %c0_85 = arith.constant 0 : index
    %76 = vector.load %arg8[%c0_82, %c2_83, %c0_84, %c0_85] : memref<1x4x16x8xbf16, #tpu.memory_space<vmem>>, vector<1x1x16x8xbf16>
    %77 = vector.shape_cast %76 : vector<1x1x16x8xbf16> to vector<16x8xbf16>
    %78 = vector.shape_cast %75 : vector<16x8xbf16> to vector<1x1x16x8xbf16>
    tpu.vector_store %arg8[%c0_82, %c2_83, %c0_84, %c0_85], %78 {strides = array<i32>} : memref<1x4x16x8xbf16, #tpu.memory_space<vmem>>, vector<1x1x16x8xbf16>,
    %c3_86 = arith.constant 3 : index
    %c0_87 = arith.constant 0 : index
    %c0_88 = arith.constant 0 : index
    %79 = vector.load %arg5[%c3_86, %c0_87, %c0_88] : memref<4x32x8xbf16, #tpu.memory_space<vmem>>, vector<1x32x8xbf16>
    %80 = vector.shape_cast %79 : vector<1x32x8xbf16> to vector<32x8xbf16>
    %cst_89 = arith.constant dense<0.000000e+00> : vector<16x8xf32>
    %81 = tpu.matmul %1, %80, %cst_89 {dimension_numbers = #tpu.dot_dimension_numbers<[1], [0], [0], [1], [0, 0, 1, 1], [], []>} : vector<16x32xbf16>, vector<32x8xbf16>, vector<16x8xf32> -> vector<16x8xf32>
    %82 = arith.truncf %81 : vector<16x8xf32> to vector<16x8xbf16>
    %c0_90 = arith.constant 0 : index
    %c3_91 = arith.constant 3 : index
    %c0_92 = arith.constant 0 : index
    %c0_93 = arith.constant 0 : index
    %83 = vector.load %arg8[%c0_90, %c3_91, %c0_92, %c0_93] : memref<1x4x16x8xbf16, #tpu.memory_space<vmem>>, vector<1x1x16x8xbf16>
    %84 = vector.shape_cast %83 : vector<1x1x16x8xbf16> to vector<16x8xbf16>
    %85 = vector.shape_cast %82 : vector<16x8xbf16> to vector<1x1x16x8xbf16>
    tpu.vector_store %arg8[%c0_90, %c3_91, %c0_92, %c0_93], %85 {strides = array<i32>} : memref<1x4x16x8xbf16, #tpu.memory_space<vmem>>, vector<1x1x16x8xbf16>,
    return
  }
  func.func @transform_0(%arg0: i32, %arg1: i32) -> (i32, i32, i32) {
    %c0_i32 = arith.constant 0 : i32
    %c0_i32_0 = arith.constant 0 : i32
    return %arg0, %arg1, %c0_i32 : i32, i32, i32
  }
  func.func @transform_1(%arg0: i32, %arg1: i32) -> (i32, i32, i32) {
    %c0_i32 = arith.constant 0 : i32
    %c0_i32_0 = arith.constant 0 : i32
    %c0_i32_1 = arith.constant 0 : i32
    %c0_i32_2 = arith.constant 0 : i32
    return %c0_i32, %c0_i32_0, %c0_i32_1 : i32, i32, i32
  }
  func.func @transform_2(%arg0: i32, %arg1: i32) -> (i32, i32, i32) {
    %c0_i32 = arith.constant 0 : i32
    %c0_i32_0 = arith.constant 0 : i32
    %c0_i32_1 = arith.constant 0 : i32
    %c0_i32_2 = arith.constant 0 : i32
    return %c0_i32, %c0_i32_0, %c0_i32_1 : i32, i32, i32
  }
  func.func @transform_3(%arg0: i32, %arg1: i32) -> (i32, i32, i32) {
    %c0_i32 = arith.constant 0 : i32
    %c0_i32_0 = arith.constant 0 : i32
    %c0_i32_1 = arith.constant 0 : i32
    %c0_i32_2 = arith.constant 0 : i32
    return %c0_i32, %c0_i32_0, %c0_i32_1 : i32, i32, i32
  }
  func.func @transform_4(%arg0: i32, %arg1: i32) -> (i32, i32, i32, i32) {
    %c0_i32 = arith.constant 0 : i32
    %c0_i32_0 = arith.constant 0 : i32
    %c0_i32_1 = arith.constant 0 : i32
    return %arg0, %c0_i32, %arg1, %c0_i32_0 : i32, i32, i32, i32
  }
  func.func @transform_5(%arg0: i32, %arg1: i32) -> (i32, i32, i32, i32) {
    %c0_i32 = arith.constant 0 : i32
    %c0_i32_0 = arith.constant 0 : i32
    %c0_i32_1 = arith.constant 0 : i32
    return %arg0, %c0_i32, %arg1, %c0_i32_0 : i32, i32, i32, i32
  }
  func.func @transform_6(%arg0: i32, %arg1: i32) -> (i32, i32, i32, i32) {
    %c0_i32 = arith.constant 0 : i32
    %c0_i32_0 = arith.constant 0 : i32
    %c0_i32_1 = arith.constant 0 : i32
    return %arg0, %c0_i32, %arg1, %c0_i32_0 : i32, i32, i32, i32
  }
}

</mosaic_0001>

<bundles_post_ra>
// kernel: tpu_custom_call.1
= control target key start
LH: loop header
LB: loop body
LE: loop exit
PB: predicated region body
PF: predicated region fallthrough
CT: control target
= control target key end

     0   :  { %s1257_s21 = smov 0   ;;  %s1259_s22 = smov 0   ;;  %s1413_s0 = inlined_call_operand.vmem [shape: bf16[2,16,32], index: 0, kind: input, shape index: {}]   ;;  %s1414_s1 = inlined_call_operand.vmem [shape: bf16[4,32,8], index: 1, kind: input, shape index: {}]   ;;  %s1415_s2 = inlined_call_operand.vmem [shape: bf16[4,32,8], index: 2, kind: input, shape index: {}]   ;;  %s1416_s3 = inlined_call_operand.vmem [shape: bf16[4,32,8], index: 3, kind: input, shape index: {}]   ;;  %s1417_s4 = inlined_call_operand.vmem [shape: bf16[2,4,16,8], index: 4, kind: output, shape index: {0}]   ;;  %s1418_s5 = inlined_call_operand.vmem [shape: bf16[2,4,16,8], index: 5, kind: output, shape index: {1}]   ;;  %s1419_s6 = inlined_call_operand.vmem [shape: bf16[2,4,16,8], index: 6, kind: output, shape index: {2}]  }
   0x1   :  { %s1261_s23 = smov 0  }
   0x2 LB: > { %s29_s24 = sadd.s32 1, %s1216_s22  ;;  %p968_p0 = scmp.ge.s32.totalorder %s1220_s23, 1  ;;  %s1220_s23 = sphi %s1261_s23, %s17_s23   ;;  %s1216_s22 = sphi %s1259_s22, %s1421_s22   ;;  %s1212_s21 = sphi %s1257_s21, %s1420_s21  }
   0x3   : > { %p31_p1 = scmp.ge.s32.totalorder %s29_s24, 2  ;;  %p242_p2 = scmp.lt.s32.totalorder %s1220_s23, 3 }
   0x5   : > { %s1423_s24 = smov (%p31_p1, %s29_s24), 0  ;;  %p243_p3 = pnand %p968_p0, %p242_p2 }
   0x6   : > { %p299_p4 = scmp.lt.s32.totalorder (!%p243_p3), %s1212_s21, 1 }
   0x7   : > { %246 = sbr.rel (%p243_p3) target bundleno = 197 (0xc5), region = 36 }
   0xc   : > { %v1151_v0 = vld [vmem:[%s1414_s1 + $0x8] sm:$0xff]  ;;  %v1153_v1 = vld [vmem:[%s1414_s1 + $0x18] sm:$0xff]  ;;  %v1150_v4 = vld [vmem:[%s1414_s1] sm:$0xff]  ;;  %s1425_s21 = smov (!%p299_p4, %s1212_s21), 1  ;;  %vm362_vm0 = vcmask 261120   ;;  %vm382_vm1 = vcmask 60416  }
   0xd   : > { %v1155_v2 = vld [vmem:[%s1414_s1 + $0x28] sm:$0xff]  ;;  %v1157_v3 = vld [vmem:[%s1414_s1 + $0x38] sm:$0xff]  ;;  %372 = vmatpush.bf16.msra.mxu0 %v1151_v0  ;;  %408 = vmatpush.bf16.msra.mxu1 %v1153_v1  ;;  %v1152_v5 = vld [vmem:[%s1414_s1 + $0x10] sm:$0xff]  ;;  %s1145_s17 = sshll.u32 %s1425_s21, 3  ;;  %s1366_s13 = sshll.u32 %s1425_s21, 5 }
   0xe   : > { %444 = vmatpush.bf16.msra.mxu2 %v1155_v2  ;;  %480 = vmatpush.bf16.msra.mxu3 %v1157_v3  ;;  %v1154_v6 = vld [vmem:[%s1414_s1 + $0x20] sm:$0xff]  ;;  %v1156_v7 = vld [vmem:[%s1414_s1 + $0x30] sm:$0xff]  ;;  %v1163_v8 = vld [vmem:[%s1415_s2 + $0x28] sm:$0xff]  ;;  %s306_s28 = scalar_lea.vmem %s1413_s0, %s1145_s17  ;;  %s316_s16 = scalar_lea.vmem %s1417_s4, %s1366_s13 }
   0xf   : > { %v1165_v9 = vld [vmem:[%s1415_s2 + $0x38] sm:$0xff]  ;;  %v1149_v10 = vld [vmem:[%s306_s28] sm:$0xff]  ;;  %v1159_v11 = vld [vmem:[%s1415_s2 + $0x8] sm:$0xff]  ;;  %s326_s18 = scalar_lea.vmem %s1418_s5, %s1366_s13  ;;  %s336_s25 = scalar_lea.vmem %s1419_s6, %s1366_s13 }
  0x10   : > { %v1161_v12 = vld [vmem:[%s1415_s2 + $0x18] sm:$0xff]  ;;  %v1162_v13 = vld [vmem:[%s1415_s2 + $0x20] sm:$0xff]  ;;  %v1164_v14 = vld [vmem:[%s1415_s2 + $0x30] sm:$0xff] }
  0x11   : > { %373 = vmatpush.bf16.msra.mxu0 %v1150_v4  ;;  %409 = vmatpush.bf16.msra.mxu1 %v1152_v5  ;;  %v1171_v15 = vld [vmem:[%s1416_s3 + $0x28] sm:$0xff]  ;;  %v1173_v16 = vld [vmem:[%s1416_s3 + $0x38] sm:$0xff]  ;;  %v1158_v17 = vld [vmem:[%s1415_s2] sm:$0xff] }
  0x12   : > { %445 = vmatpush.bf16.msra.mxu2 %v1154_v6  ;;  %481 = vmatpush.bf16.msra.mxu3 %v1156_v7  ;;  %v1160_v18 = vld [vmem:[%s1415_s2 + $0x10] sm:$0xff]  ;;  %v1167_v19 = vld [vmem:[%s1416_s3 + $0x8] sm:$0xff]  ;;  %v1169_v20 = vld [vmem:[%s1416_s3 + $0x18] sm:$0xff] }
  0x13   : > { %v1170_v21 = vld [vmem:[%s1416_s3 + $0x20] sm:$0xff]  ;;  %v1172_v22 = vld [vmem:[%s1416_s3 + $0x30] sm:$0xff] }
  0x14   : > { %989 = vmatmul.msk.bf16.vlgmr.msra.gmra.mxu0 %vm362_vm0, %v1149_v10  ;;  %1002 = vmatmul.msk.bf16.vlgmr.msra.gmra.mxu1 %vm362_vm0, %v1149_v10  ;;  %v1166_v23 = vld [vmem:[%s1416_s3] sm:$0xff]  ;;  %v1168_v24 = vld [vmem:[%s1416_s3 + $0x10] sm:$0xff] }
  0x15   : > { %1017 = vmatmul.msk.bf16.vlgmr.msra.gmra.mxu2 %vm362_vm0, %v1149_v10  ;;  %1032 = vmatmul.msk.bf16.vlgmr.msra.gmra.mxu3 %vm362_vm0, %v1149_v10 }
  0x16   : > { %586 = vmatpush.bf16.msrb.mxu2 %v1163_v8  ;;  %622 = vmatpush.bf16.msrb.mxu3 %v1165_v9 }
  0x17   : > { %515 = vmatpush.bf16.msrb.mxu0 %v1159_v11  ;;  %550 = vmatpush.bf16.msrb.mxu1 %v1161_v12 }
  0x1a   : > { %587 = vmatpush.bf16.msrb.mxu2 %v1162_v13  ;;  %623 = vmatpush.bf16.msrb.mxu3 %v1164_v14 }
  0x1b   : > { %516 = vmatpush.bf16.msrb.mxu0 %v1158_v17  ;;  %551 = vmatpush.bf16.msrb.mxu1 %v1160_v18 }
  0x1e   : > { %728 = vmatpush.bf16.msra.mxu2 %v1171_v15  ;;  %764 = vmatpush.bf16.msra.mxu3 %v1173_v16 }
  0x1f   : > { %657 = vmatpush.bf16.msra.mxu0 %v1167_v19  ;;  %692 = vmatpush.bf16.msra.mxu1 %v1169_v20 }
  0x22   : > { %729 = vmatpush.bf16.msra.mxu2 %v1170_v21  ;;  %765 = vmatpush.bf16.msra.mxu3 %v1172_v22 }
  0x23   : > { %658 = vmatpush.bf16.msra.mxu0 %v1166_v23  ;;  %693 = vmatpush.bf16.msra.mxu1 %v1168_v24 }
  0x24   : > { %1043 = vmatmul.msk.bf16.vlgmr.msrb.gmra.mxu0 %vm362_vm0, %v1149_v10  ;;  %1056 = vmatmul.msk.bf16.vlgmr.msrb.gmra.mxu1 %vm362_vm0, %v1149_v10 }
  0x25   : > { %1071 = vmatmul.msk.bf16.vlgmr.msrb.gmra.mxu2 %vm362_vm0, %v1149_v10  ;;  %1086 = vmatmul.msk.bf16.vlgmr.msrb.gmra.mxu3 %vm362_vm0, %v1149_v10 }
  0x34   : > { %1097 = vmatmul.msk.bf16.vlgmr.msra.gmra.mxu0 %vm362_vm0, %v1149_v10  ;;  %1110 = vmatmul.msk.bf16.vlgmr.msra.gmra.mxu1 %vm362_vm0, %v1149_v10 }
  0x35   : > { %1125 = vmatmul.msk.bf16.vlgmr.msra.gmra.mxu2 %vm362_vm0, %v1149_v10  ;;  %1140 = vmatmul.msk.bf16.vlgmr.msra.gmra.mxu3 %vm362_vm0, %v1149_v10 }
  0x91   : > { %v375_v25 = vpop.f32.mrf.mxu0  ;;  %v411_v26 = vpop.f32.mrf.mxu1 }
  0x92   : > { %v380_v27 = vpack.c.bf16 %v375_v25, %v375_v25  ;;  %v416_v28 = vpack.c.bf16 %v411_v26, %v411_v26 }
  0x94   : > { %383 = vst.msk [vmem:[%s316_s16] sm:$0xf] %vm382_vm1, %v380_v27 }
  0x95   : > { %1003 = vst.msk [vmem:[%s316_s16 + $0x8] sm:$0xf] %vm382_vm1, %v416_v28 }
  0x98   : > { %v447_v29 = vpop.f32.mrf.mxu2  ;;  %v483_v30 = vpop.f32.mrf.mxu3 }
  0x99   : > { %v452_v31 = vpack.c.bf16 %v447_v29, %v447_v29  ;;  %v488_v32 = vpack.c.bf16 %v483_v30, %v483_v30  ;;  %v377_v33 = vpop.f32.mrf.mxu0  ;;  %v413_v34 = vpop.f32.mrf.mxu1 }
  0x9a   : > { %v381_v35 = vpack.c.bf16 %v377_v33, %v377_v33  ;;  %v417_v36 = vpack.c.bf16 %v413_v34, %v413_v34 }
  0x9b   : > { %1018 = vst.msk [vmem:[%s316_s16 + $0x10] sm:$0xf] %vm382_vm1, %v452_v31 }
  0x9c   : > { %1033 = vst.msk [vmem:[%s316_s16 + $0x18] sm:$0xf] %vm382_vm1, %v488_v32 }
  0x9d   : > { %384 = vst.msk [vmem:[%s316_s16 + $0x4] sm:$0xf] %vm382_vm1, %v381_v35 }
  0x9e   : > { %1004 = vst.msk [vmem:[%s316_s16 + $0xc] sm:$0xf] %vm382_vm1, %v417_v36 }
  0xa0   : > { %v449_v37 = vpop.f32.mrf.mxu2  ;;  %v485_v38 = vpop.f32.mrf.mxu3 }
  0xa1   : > { %v453_v39 = vpack.c.bf16 %v449_v37, %v449_v37  ;;  %v489_v40 = vpack.c.bf16 %v485_v38, %v485_v38  ;;  %v518_v41 = vpop.f32.mrf.mxu0  ;;  %v553_v42 = vpop.f32.mrf.mxu1 }
  0xa2   : > { %v523_v43 = vpack.c.bf16 %v518_v41, %v518_v41  ;;  %v558_v44 = vpack.c.bf16 %v553_v42, %v553_v42 }
  0xa3   : > { %1019 = vst.msk [vmem:[%s316_s16 + $0x14] sm:$0xf] %vm382_vm1, %v453_v39 }
  0xa4   : > { %1034 = vst.msk [vmem:[%s316_s16 + $0x1c] sm:$0xf] %vm382_vm1, %v489_v40 }
  0xa5   : > { %525 = vst.msk [vmem:[%s326_s18] sm:$0xf] %vm382_vm1, %v523_v43 }
  0xa6   : > { %1057 = vst.msk [vmem:[%s326_s18 + $0x8] sm:$0xf] %vm382_vm1, %v558_v44 }
  0xa8   : > { %v589_v45 = vpop.f32.mrf.mxu2  ;;  %v625_v46 = vpop.f32.mrf.mxu3 }
  0xa9   : > { %v594_v47 = vpack.c.bf16 %v589_v45, %v589_v45  ;;  %v630_v48 = vpack.c.bf16 %v625_v46, %v625_v46  ;;  %v520_v49 = vpop.f32.mrf.mxu0  ;;  %v555_v50 = vpop.f32.mrf.mxu1 }
  0xaa   : > { %v524_v51 = vpack.c.bf16 %v520_v49, %v520_v49  ;;  %v559_v52 = vpack.c.bf16 %v555_v50, %v555_v50 }
  0xab   : > { %1072 = vst.msk [vmem:[%s326_s18 + $0x10] sm:$0xf] %vm382_vm1, %v594_v47 }
  0xac   : > { %1087 = vst.msk [vmem:[%s326_s18 + $0x18] sm:$0xf] %vm382_vm1, %v630_v48 }
  0xad   : > { %526 = vst.msk [vmem:[%s326_s18 + $0x4] sm:$0xf] %vm382_vm1, %v524_v51 }
  0xae   : > { %1058 = vst.msk [vmem:[%s326_s18 + $0xc] sm:$0xf] %vm382_vm1, %v559_v52 }
  0xb0   : > { %v591_v53 = vpop.f32.mrf.mxu2  ;;  %v627_v54 = vpop.f32.mrf.mxu3 }
  0xb1   : > { %v595_v55 = vpack.c.bf16 %v591_v53, %v591_v53  ;;  %v631_v56 = vpack.c.bf16 %v627_v54, %v627_v54  ;;  %v660_v57 = vpop.f32.mrf.mxu0  ;;  %v695_v58 = vpop.f32.mrf.mxu1 }
  0xb2   : > { %v665_v59 = vpack.c.bf16 %v660_v57, %v660_v57  ;;  %v700_v60 = vpack.c.bf16 %v695_v58, %v695_v58 }
  0xb3   : > { %1073 = vst.msk [vmem:[%s326_s18 + $0x14] sm:$0xf] %vm382_vm1, %v595_v55 }
  0xb4   : > { %1088 = vst.msk [vmem:[%s326_s18 + $0x1c] sm:$0xf] %vm382_vm1, %v631_v56 }
  0xb5   : > { %667 = vst.msk [vmem:[%s336_s25] sm:$0xf] %vm382_vm1, %v665_v59 }
  0xb6   : > { %1111 = vst.msk [vmem:[%s336_s25 + $0x8] sm:$0xf] %vm382_vm1, %v700_v60 }
  0xb8   : > { %v731_v61 = vpop.f32.mrf.mxu2  ;;  %v767_v62 = vpop.f32.mrf.mxu3 }
  0xb9   : > { %v736_v63 = vpack.c.bf16 %v731_v61, %v731_v61  ;;  %v772_v0 = vpack.c.bf16 %v767_v62, %v767_v62  ;;  %v662_v1 = vpop.f32.mrf.mxu0  ;;  %v697_v2 = vpop.f32.mrf.mxu1 }
  0xba   : > { %v666_v3 = vpack.c.bf16 %v662_v1, %v662_v1  ;;  %v701_v4 = vpack.c.bf16 %v697_v2, %v697_v2 }
  0xbb   : > { %1126 = vst.msk [vmem:[%s336_s25 + $0x10] sm:$0xf] %vm382_vm1, %v736_v63 }
  0xbc   : > { %1141 = vst.msk [vmem:[%s336_s25 + $0x18] sm:$0xf] %vm382_vm1, %v772_v0 }
  0xbd   : > { %668 = vst.msk [vmem:[%s336_s25 + $0x4] sm:$0xf] %vm382_vm1, %v666_v3 }
  0xbe   : > { %1112 = vst.msk [vmem:[%s336_s25 + $0xc] sm:$0xf] %vm382_vm1, %v701_v4 }
  0xc0   : > { %v733_v5 = vpop.f32.mrf.mxu2  ;;  %v769_v6 = vpop.f32.mrf.mxu3 }
  0xc1   : > { %v737_v7 = vpack.c.bf16 %v733_v5, %v733_v5  ;;  %v773_v8 = vpack.c.bf16 %v769_v6, %v769_v6 }
  0xc3   : > { %1127 = vst.msk [vmem:[%s336_s25 + $0x14] sm:$0xf] %vm382_vm1, %v737_v7 }
  0xc4   : > { %1142 = vst.msk [vmem:[%s336_s25 + $0x1c] sm:$0xf] %vm382_vm1, %v773_v8 }
  0xc5 PF: > { %s17_s23 = sadd.s32 1, %s1220_s23   ;;  %s1420_s21 = smov %s1216_s22 }
  0xc6   : > { %p14_p5 = scmp.ge.s32.totalorder %s17_s23, 4   ;;  %s1421_s22 = smov %s1423_s24 }
  0xc8   :  { %16 = sbr.rel (!%p14_p5) target bundleno = 2 (0x2), region = 108 }

</bundles_post_ra>
